<compile_context>
chip_gen: v6e
topology: v6e:2x2x1
jax: 0.10.0
libtpu: 0.0.40
codegen_flags: <defaults>
</compile_context>

<pallas_src>
from functools import partial

import jax
import jax.numpy as jnp
from jax.experimental import pallas as pl
from jax.experimental.pallas import tpu as pltpu


# ----------------------------------------------------------------------------
# Pallas kernel: one (1, S, TILE_C) block -> (res, moving_mean) blocks.
# ----------------------------------------------------------------------------
def _series_decomp_kernel(x_ref, res_ref, mean_ref, *, kernel_size: int):
    # x_ref / res_ref / mean_ref : (1, S, Cb) blocks.
    x = x_ref[0].astype(jnp.float32)                      # (S, Cb)
    s, cb = x.shape
    pad = (kernel_size - 1) // 2

    if pad > 0:
        front = jnp.broadcast_to(x[0:1, :], (pad, cb))    # replicate first row
        end = jnp.broadcast_to(x[s - 1:s, :], (pad, cb))  # replicate last row
        xp = jnp.concatenate([front, x, end], axis=0)     # (S + 2*pad, Cb)
    else:
        xp = x

    # Unrolled window sum: K static shifted slices (VPU adds only).
    acc = xp[0:s, :]
    for j in range(1, kernel_size):
        acc = acc + xp[j:j + s, :]
    mean = acc * (1.0 / kernel_size)

    mean_ref[0] = mean.astype(mean_ref.dtype)
    res_ref[0] = (x - mean).astype(res_ref.dtype)


# ----------------------------------------------------------------------------
# Wrapper
# ----------------------------------------------------------------------------
def _pick_tile_c(c: int) -> int:
    """Largest lane-dense channel tile (multiple of 128, <= 512) dividing C,
    else the full channel extent (exempt from the (8,128) rule)."""
    if c % 128 == 0:
        for cand in (512, 384, 256, 128):
            if c % cand == 0:
                return cand
    return c


def series_decomp(x, kernel_size: int):
    """x: (B, S, C) float; returns (res, moving_mean), each (B, S, C)."""
    if kernel_size % 2 != 1:
        # PyTorch AvgPool1d with even K would shorten the sequence by 1;
        # TimeMixer always uses odd kernels.
        raise ValueError("series_decomp Pallas kernel requires odd kernel_size")

    B, S, C = x.shape
    tile_c = _pick_tile_c(C)
    grid = (B, C // tile_c)

    spec = pl.BlockSpec((1, S, tile_c), lambda b, c: (b, 0, c))

    res, mean = pl.pallas_call(
        partial(_series_decomp_kernel, kernel_size=kernel_size),
        out_shape=(
            jax.ShapeDtypeStruct((B, S, C), x.dtype),
            jax.ShapeDtypeStruct((B, S, C), x.dtype),
        ),
        grid=grid,
        in_specs=[spec],
        out_specs=(spec, spec),
        compiler_params=pltpu.CompilerParams(
            dimension_semantics=("parallel", "parallel"),
        ),
    )(x)
    return res, mean


# ----------------------------------------------------------------------------
# Pure-JAX reference (semantically identical to the PyTorch forward).
# ----------------------------------------------------------------------------
def series_decomp_ref(x, kernel_size: int):
    pad = (kernel_size - 1) // 2
    front = jnp.repeat(x[:, 0:1, :], pad, axis=1)
    end = jnp.repeat(x[:, -1:, :], pad, axis=1)
    xp = jnp.concatenate([front, x, end], axis=1)          # (B, S+2*pad, C)
    S = x.shape[1]
    windows = jnp.stack([xp[:, j:j + S, :] for j in range(kernel_size)], axis=0)
    mean = jnp.mean(windows, axis=0)
    res = x - mean
    return res, mean


if __name__ == "__main__":
    # Small shapes consistent with a TimeMixer-style input: batch=2, seq=16,
    # channels=32, decomposition kernel_size=5 (odd, as in the model).
    B, S, C = 2, 16, 32
    kernel_size = 5

    key = jax.random.PRNGKey(0)
    x = jax.random.normal(key, (B, S, C), dtype=jnp.float32)

    res, mean = series_decomp(x, kernel_size)
    res = jax.block_until_ready(res)
    mean = jax.block_until_ready(mean)

    res_ref, mean_ref = series_decomp_ref(x, kernel_size)

    assert res.shape == (B, S, C) and mean.shape == (B, S, C)
    assert jnp.allclose(mean, mean_ref, atol=1e-5, rtol=1e-5), \
        float(jnp.max(jnp.abs(mean - mean_ref)))
    assert jnp.allclose(res, res_ref, atol=1e-5, rtol=1e-5), \
        float(jnp.max(jnp.abs(res - res_ref)))

    print("KERNEL_OK")
</pallas_src>

<mosaic_0001>
module attributes {stable_mosaic.version = 11 : i64} {
  func.func @_series_decomp_kernel(%arg0: i32, %arg1: i32, %arg2: memref<1x16x32xf32, #tpu.memory_space<vmem>>, %arg3: memref<1x16x32xf32, #tpu.memory_space<vmem>>, %arg4: memref<1x16x32xf32, #tpu.memory_space<vmem>>) attributes {dimension_semantics = [#tpu.dimension_semantics<parallel>, #tpu.dimension_semantics<parallel>], iteration_bounds = array<i64: 2, 1>, scalar_prefetch = 0 : i64, scratch_operands = 0 : i64, tpu.core_type = #tpu.core_type<tc>, window_params = [{transform_indices = @transform_0, window_bounds = array<i64: 1, 16, 32>}, {transform_indices = @transform_1, window_bounds = array<i64: 1, 16, 32>}, {transform_indices = @transform_2, window_bounds = array<i64: 1, 16, 32>}]} {
    %c0 = arith.constant 0 : index
    %c0_0 = arith.constant 0 : index
    %c0_1 = arith.constant 0 : index
    %0 = vector.load %arg2[%c0, %c0_0, %c0_1] : memref<1x16x32xf32, #tpu.memory_space<vmem>>, vector<1x16x32xf32>
    %1 = vector.shape_cast %0 : vector<1x16x32xf32> to vector<16x32xf32>
    %2 = vector.extract_strided_slice %1 {offsets = [0, 0], sizes = [1, 32], strides = [1, 1]} : vector<16x32xf32> to vector<1x32xf32>
    %3 = vector.shape_cast %2 : vector<1x32xf32> to vector<1x32xf32>
    %4 = vector.broadcast %3 : vector<1x32xf32> to vector<2x32xf32>
    %5 = vector.extract_strided_slice %1 {offsets = [15, 0], sizes = [1, 32], strides = [1, 1]} : vector<16x32xf32> to vector<1x32xf32>
    %6 = vector.shape_cast %5 : vector<1x32xf32> to vector<1x32xf32>
    %7 = vector.broadcast %6 : vector<1x32xf32> to vector<2x32xf32>
    %8 = tpu.concatenate %4, %1, %7 in 0 : vector<2x32xf32>, vector<16x32xf32>, vector<2x32xf32> -> vector<20x32xf32>
    %9 = vector.extract_strided_slice %8 {offsets = [0, 0], sizes = [16, 32], strides = [1, 1]} : vector<20x32xf32> to vector<16x32xf32>
    %10 = vector.extract_strided_slice %8 {offsets = [1, 0], sizes = [16, 32], strides = [1, 1]} : vector<20x32xf32> to vector<16x32xf32>
    %11 = arith.addf %9, %10 : vector<16x32xf32>
    %12 = vector.extract_strided_slice %8 {offsets = [2, 0], sizes = [16, 32], strides = [1, 1]} : vector<20x32xf32> to vector<16x32xf32>
    %13 = arith.addf %11, %12 : vector<16x32xf32>
    %14 = vector.extract_strided_slice %8 {offsets = [3, 0], sizes = [16, 32], strides = [1, 1]} : vector<20x32xf32> to vector<16x32xf32>
    %15 = arith.addf %13, %14 : vector<16x32xf32>
    %16 = vector.extract_strided_slice %8 {offsets = [4, 0], sizes = [16, 32], strides = [1, 1]} : vector<20x32xf32> to vector<16x32xf32>
    %17 = arith.addf %15, %16 : vector<16x32xf32>
    %cst = arith.constant 2.000000e-01 : f32
    %18 = vector.broadcast %cst : f32 to vector<16x32xf32>
    %19 = arith.mulf %17, %18 : vector<16x32xf32>
    %c0_2 = arith.constant 0 : index
    %c0_3 = arith.constant 0 : index
    %c0_4 = arith.constant 0 : index
    %20 = vector.load %arg4[%c0_2, %c0_3, %c0_4] : memref<1x16x32xf32, #tpu.memory_space<vmem>>, vector<1x16x32xf32>
    %21 = vector.shape_cast %20 : vector<1x16x32xf32> to vector<16x32xf32>
    %22 = vector.shape_cast %19 : vector<16x32xf32> to vector<1x16x32xf32>
    tpu.vector_store %arg4[%c0_2, %c0_3, %c0_4], %22 {strides = array<i32>} : memref<1x16x32xf32, #tpu.memory_space<vmem>>, vector<1x16x32xf32>,
    %23 = arith.subf %1, %19 : vector<16x32xf32>
    %c0_5 = arith.constant 0 : index
    %c0_6 = arith.constant 0 : index
    %c0_7 = arith.constant 0 : index
    %24 = vector.load %arg3[%c0_5, %c0_6, %c0_7] : memref<1x16x32xf32, #tpu.memory_space<vmem>>, vector<1x16x32xf32>
    %25 = vector.shape_cast %24 : vector<1x16x32xf32> to vector<16x32xf32>
    %26 = vector.shape_cast %23 : vector<16x32xf32> to vector<1x16x32xf32>
    tpu.vector_store %arg3[%c0_5, %c0_6, %c0_7], %26 {strides = array<i32>} : memref<1x16x32xf32, #tpu.memory_space<vmem>>, vector<1x16x32xf32>,
    return
  }
  func.func @transform_0(%arg0: i32, %arg1: i32) -> (i32, i32, i32) {
    %c0_i32 = arith.constant 0 : i32
    %c0_i32_0 = arith.constant 0 : i32
    return %arg0, %c0_i32, %arg1 : i32, i32, i32
  }
  func.func @transform_1(%arg0: i32, %arg1: i32) -> (i32, i32, i32) {
    %c0_i32 = arith.constant 0 : i32
    %c0_i32_0 = arith.constant 0 : i32
    return %arg0, %c0_i32, %arg1 : i32, i32, i32
  }
  func.func @transform_2(%arg0: i32, %arg1: i32) -> (i32, i32, i32) {
    %c0_i32 = arith.constant 0 : i32
    %c0_i32_0 = arith.constant 0 : i32
    return %arg0, %c0_i32, %arg1 : i32, i32, i32
  }
}

</mosaic_0001>

<bundles_post_ra>
// kernel: tpu_custom_call.1
= control target key start
LH: loop header
LB: loop body
LE: loop exit
PB: predicated region body
PF: predicated region fallthrough
CT: control target
= control target key end

     0   :  { %8 = vsyncpa [#allocation3], 0  ;;  %s880_s0 = inlined_call_operand.hbm [shape: f32[2,16,32], index: 0, kind: input, shape index: {}]   ;;  %s881_s1 = inlined_call_operand.hbm [shape: f32[2,16,32], index: 1, kind: output, shape index: {0}]   ;;  %s882_s2 = inlined_call_operand.hbm [shape: f32[2,16,32], index: 2, kind: output, shape index: {1}]  }
   0x1   :  { %10 = vsyncpa [#allocation3 + $0x1], 0 }
   0x2   :  { %11 = vsyncpa [#allocation4], 0 }
   0x3   :  { %13 = vsyncpa [#allocation4 + $0x1], 0 }
   0x4   :  { %14 = vsyncpa [#allocation7], 0 }
   0x5   :  { %16 = vsyncpa [#allocation7 + $0x1], 0  ;;  %s675_s9 = smov 0   ;;  %s677_s10 = smov 0  }
   0x6   :  { %s679_s11 = smov 0   ;;  %s681_s12 = smov 0  }
   0x7   :  { %s683_s13 = smov 0   ;;  %s685_s14 = smov 0  }
   0x8 LB: > { %s420_s15 = sadd.s32 4294967295, %s651_s14   ;;  %s421_s16 = sadd.s32 4294967294, %s651_s14   ;;  %s651_s14 = sphi %s685_s14, %s22_s14   ;;  %s647_s13 = sphi %s683_s13, %s893_s13   ;;  %s643_s12 = sphi %s681_s12, %s892_s12   ;;  %s639_s11 = sphi %s679_s11, %s891_s11   ;;  %s635_s10 = sphi %s677_s10, %s890_s10   ;;  %s631_s9 = sphi %s675_s9, %s889_s9  }
   0x9   : > { %s34_s17 = sadd.s32 1, %s647_s13  ;;  %s43_s18 = sadd.s32 1, %s639_s11 }
   0xa   : > { %p36_p0 = scmp.ge.s32.totalorder %s34_s17, 2  ;;  %p50_p1 = scmp.ne.s32.totalorder %s639_s11, %s635_s10 }
   0xb   : > { %p51_p2 = scmp.eq.s32.totalorder %s651_s14, 0  ;;  %p56_p3 = scmp.ne.s32.totalorder %s635_s10, %s631_s9 }
   0xc   : > { %s895_s17 = smov (%p36_p0, %s34_s17), 0  ;;  %p57_p5 = scmp.eq.s32.totalorder %s420_s15, 0 }
   0xd   : > { %p716_p4 = por %p51_p2, %p50_p1  ;;  %s38_s20 = ssub.s32 %s647_s13, %s895_s17 }
   0xe   : > { %p82_p6 = scmp.eq.s32.totalorder %s420_s15, 1  ;;  %p41_p7 = scmp.eq.s32.totalorder %s38_s20, 0 }
   0xf   : > { %p722_p8 = por %p57_p5, %p56_p3  ;;  %p88_p10 = scmp.eq.s32.totalorder %s421_s16, 1 }
  0x10   : > { %p726_p9 = por %p82_p6, %p50_p1  ;;  %p459_p13 = scmp.lt.s32.totalorder %s651_s14, 2 }
  0x11   : > { %s731_s23 = scalar_select %p41_p7, %s639_s11, %s43_s18  }
  0x12   : > { %p733_p11 = por %p88_p10, %p56_p3  ;;  %s136_s25 = sand.u32 1, %s639_s11  }
  0x13   : > { %s424_s26 = sshll.u32 %s136_s25, 4  ;;  %s439_s27 = sshll.u32 %s647_s13, 8 }
  0x14   : > { %s147_s30 = scalar_lea.hbm %s880_s0, %s439_s27  ;;  %s140_s3 = scalar_lea.vmem [#allocation2], %s424_s26 }
  0x15   : > { %s148_s4 = sshll.u32 %s140_s3, 4  ;;  %p746_p0 = pnand %p459_p13, %p716_p4  ;;  %s149_s4 = int_to_ptr.vmem [resolvable:$true] %s148_s4 }
  0x16   : > { %p427_p1 = scmp.ge.s32.totalorder %s651_s14, 1  ;;  %s137_s6 = scalar_lea.sflag [#allocation3], %s136_s25 }
  0x17   : > { %p515_p2 = pneg %p746_p0  ;;  %s526_s7 = scalar_lea.vmem %s149_s4, 256 }
  0x18   : > { %p527_p3 = scmp.ne.s32.totalorder %s149_s4, %s526_s7  ;;  %s653_s8 = smov [#allocation2]  }
  0x19   : > { %s531_s15 = sshll.u32 %s653_s8, 4  ;;  %s532_s15 = int_to_ptr.vmem [resolvable:$false] %s531_s15 }
  0x1a   : > { %p529_p5 = pnand %p527_p3, %p515_p2  ;;  %s533_s16 = scalar_lea.vmem %s532_s15, 512 }
  0x1b   : > { %p534_p7 = scmp.lt.s32.totalorder %s149_s4, %s532_s15  ;;  %p535_p10 = scmp.lt.s32.totalorder %s533_s16, %s526_s7 }
  0x1c   : > { %p530_p6 = pneg %p529_p5 }
  0x1d   : > { %p536_p12 = por %p535_p10, %p534_p7 }
  0x1f   : > { %p537_p4 = pnand %p536_p12, %p530_p6 }
  0x21   : > { %540 = shalt.err (!%p537_p4)
}
  0x22   : > { %s654_s18 = smov 128   ;;  %s655_s19 = smov 8  }
  0x23   : > { %451 = dma.hbm_to_vmem [thread:$0]  (!%p746_p0), %s147_s30, 256, %s149_s4, %s137_s6, %s654_s18, %s654_s18, %s655_s19  }
  0x24   : > { %p156_p13 = scmp.lt.s32.totalorder %s651_s14, 3 }
  0x26   : > { %p157_p2 = pnand %p427_p1, %p156_p13 }
  0x27   : > { %s759_s20 = sand.u32 (!%p157_p2), 1, %s635_s10  }
  0x28   : > { %160 = sbr.rel (%p157_p2) target bundleno = 106 (0x6a), region = 24  ;;  %s762_s25 = sshll.u32 (!%p157_p2), %s759_s20, 4 }
  0x29   : > { %s163_s26 = scalar_lea.sflag (!%p157_p2), [#allocation3], %s759_s20  ;;  %s166_s27 = scalar_lea.vmem (!%p157_p2), [#allocation2], %s762_s25 }
  0x2d   : > { %618 = dma.done.wait (%p722_p8), %s163_s26, 256  }
  0x2e   : > { %620 = vsyncadd (%p722_p8), %s163_s26, 4294967040  ;;  %v194_v0 = vlaneseq  ;;  %v192_v4 = vld [vmem:[%s166_s27] sm:$0xff]  ;;  %v770_v5 = vld [vmem:[%s166_s27 + $0x8] sm:$0xff]  ;;  %vm204_vm0 = vcmask 1041408   ;;  %vm215_vm1 = vcmask 1046528   ;;  %vm225_vm2 = vcmask 1045504  }
  0x2f   : > { %v205_v7 = vrot.slane %v192_v4, 6  ;;  %v206_v8 = vrot.slane %v770_v5, 6  ;;  %vm235_vm3 = vcmask 1044480   ;;  %vm245_vm4 = vcmask 1043456   ;;  %s191_s21 = scalar_lea.vmem [#allocation6], %s762_s25  ;;  %s440_s29 = sshll.u32 %s643_s12, 8 }
  0x30   : > { %v195_v1 = vshrl.u32 %v194_v0, 7  ;;  %s301_s28 = sshll.u32 %s191_s21, 4  ;;  %vm257_vm5 = vcmask 261120   ;;  %s785_s30 = scalar_lea.vmem [#allocation5], %s762_s25  ;;  %s782_s28 = int_to_ptr.vmem [resolvable:$true] %s301_s28 }
  0x31   : > { %v207_v10 = vsel %vm204_vm0, %v205_v7, %v206_v8  ;;  %s284_s3 = sshll.u32 %s785_s30, 4  ;;  %s792_s12 = scalar_lea.hbm %s882_s2, %s440_s29  ;;  %s794_s3 = int_to_ptr.vmem [resolvable:$true] %s284_s3 }
  0x32   : > { %v196_v2 = vsub.s32 0, %v195_v1  ;;  %v200_v3 = vsub.s32 7, %v195_v1  ;;  %v217_v14 = vrot.slane %v207_v10, 1  ;;  %v227_v16 = vrot.slane %v207_v10, 2  ;;  %s803_s8 = scalar_lea.hbm %s881_s1, %s440_s29  ;;  %s270_s15 = scalar_lea.sflag [#allocation7], %s759_s20 }
  0x33   : > { %v237_v18 = vrot.slane %v207_v10, 3  ;;  %v247_v20 = vrot.slane %v207_v10, 4  ;;  %s541_s16 = scalar_lea.vmem %s782_s28, 256  ;;  %s656_s18 = smov [#allocation6]  }
  0x34   : > { %v197_v6 = vrot.slane %v192_v4, %v196_v2  ;;  %v201_v9 = vrot.slane %v770_v5, %v200_v3  ;;  %p542_p8 = scmp.ne.s32.totalorder %s782_s28, %s541_s16  ;;  %s545_s19 = sshll.u32 %s656_s18, 4  ;;  %s546_s19 = int_to_ptr.vmem [resolvable:$false] %s545_s19 }
  0x35   : > { %s547_s25 = scalar_lea.vmem %s546_s19, 512  ;;  %p548_p1 = scmp.lt.s32.totalorder %s782_s28, %s546_s19 }
  0x36   : > { %v211_v11 = vsel %vm204_vm0, %v197_v6, %v205_v7  ;;  %v212_v12 = vsel %vm204_vm0, %v206_v8, %v201_v9  ;;  %p543_p12 = pnand %p542_p8, %p726_p9  ;;  %p549_p3 = scmp.lt.s32.totalorder %s547_s25, %s541_s16 }
  0x37   : > { %v216_v13 = vrot.slane %v211_v11, 1  ;;  %v226_v15 = vrot.slane %v211_v11, 2  ;;  %v236_v17 = vrot.slane %v211_v11, 3  ;;  %v246_v19 = vrot.slane %v211_v11, 4 }
  0x38   : > { %v219_v23 = vrot.slane %v212_v12, 1  ;;  %v229_v24 = vrot.slane %v212_v12, 2  ;;  %v239_v26 = vrot.slane %v212_v12, 3  ;;  %v249_v30 = vrot.slane %v212_v12, 4  ;;  %p544_p0 = pneg %p543_p12  ;;  %p550_p5 = por %p549_p3, %p548_p1 }
  0x39   : > { %v218_v21 = vsel %vm215_vm1, %v216_v13, %v217_v14  ;;  %v228_v22 = vsel %vm225_vm2, %v226_v15, %v227_v16  ;;  %v238_v27 = vsel %vm235_vm3, %v236_v17, %v237_v18  ;;  %v248_v33 = vsel %vm245_vm4, %v246_v19, %v247_v20 }
  0x3a   : > { %v223_v25 = vadd.f32 %v218_v21, %v211_v11  ;;  %v220_v28 = vsel %vm215_vm1, %v217_v14, %v219_v23  ;;  %v230_v29 = vsel %vm225_vm2, %v227_v16, %v229_v24  ;;  %v240_v34 = vsel %vm235_vm3, %v237_v18, %v239_v26  ;;  %p551_p6 = pnand %p550_p5, %p544_p0 }
  0x3b   : > { %v224_v32 = vadd.f32 %v220_v28, %v207_v10  ;;  %v250_v37 = vsel %vm245_vm4, %v247_v20, %v249_v30 }
  0x3c   : > { %v233_v31 = vadd.f32 %v228_v22, %v223_v25 }
  0x3d   : > { %v234_v36 = vadd.f32 %v230_v29, %v224_v32 }
  0x3e   : > { %v243_v35 = vadd.f32 %v238_v27, %v233_v31 }
  0x3f   : > { %v244_v39 = vadd.f32 %v240_v34, %v234_v36 }
  0x40   : > { %v253_v38 = vadd.f32 %v248_v33, %v243_v35 }
  0x41   : > { %v254_v41 = vadd.f32 %v250_v37, %v244_v39 }
  0x42   : > { %v255_v40 = vmul.f32 0.2, %v253_v38 }
  0x43   : > { %v256_v42 = vmul.f32 0.2, %v254_v41 }
  0x44   : > { %258 = vst.msk [vmem:[%s191_s21] sm:$0xff] %vm257_vm5, %v255_v40  ;;  %v260_v43 = vsub.f32 %v192_v4, %v255_v40 }
  0x45   : > { %259 = vst.msk [vmem:[%s191_s21 + $0x8] sm:$0xff] %vm257_vm5, %v256_v42  ;;  %v261_v44 = vsub.f32 %v770_v5, %v256_v42 }
  0x46   : > { %262 = vst.msk [vmem:[%s785_s30] sm:$0xff] %vm257_vm5, %v260_v43 }
  0x47   : > { %554 = shalt.err (!%p551_p6)
}
  0x48   : > { %s555_s26 = scalar_lea.hbm %s792_s12, 256  ;;  %s559_s29 = scalar_lea.hbm %s882_s2, 512 }
  0x49   : > { %p556_p7 = scmp.ne.s32.totalorder %s792_s12, %s555_s26  ;;  %p560_p13 = scmp.lt.s32.totalorder %s792_s12, %s882_s2 }
  0x4a   : > { %p561_p2 = scmp.lt.s32.totalorder %s559_s29, %s555_s26 }
  0x4b   : > { %p557_p10 = pnand %p556_p7, %p726_p9 }
  0x4c   : > { %p562_p8 = por %p561_p2, %p560_p13 }
  0x4d   : > { %p558_p4 = pneg %p557_p10 }
  0x4f   : > { %p563_p12 = pnand %p562_p8, %p558_p4 }
  0x51   : > { %566 = shalt.err (!%p563_p12)
}
  0x52   : > { %s657_s6 = smov 128   ;;  %s658_s7 = smov 8   ;;  %263 = vst.msk [vmem:[%s785_s30 + $0x8] sm:$0xff] %vm257_vm5, %v261_v44 }
  0x53   : > { %445 = dma.vmem_to_hbm [thread:$0]  (%p726_p9), %s782_s28, 256, %s792_s12, %s270_s15, %s657_s6, %s657_s6, %s658_s7  }
  0x54   : > { %s265_s16 = scalar_lea.sflag [#allocation4], %s759_s20  ;;  %s567_s18 = scalar_lea.vmem %s794_s3, 256 }
  0x55   : > { %p568_p0 = scmp.ne.s32.totalorder %s794_s3, %s567_s18  ;;  %s659_s19 = smov [#allocation5]  }
  0x56   : > { %s571_s25 = sshll.u32 %s659_s19, 4  ;;  %s572_s25 = int_to_ptr.vmem [resolvable:$false] %s571_s25 }
  0x57   : > { %p569_p1 = pnand %p568_p0, %p726_p9  ;;  %s573_s26 = scalar_lea.vmem %s572_s25, 512 }
  0x58   : > { %p574_p5 = scmp.lt.s32.totalorder %s794_s3, %s572_s25  ;;  %p575_p6 = scmp.lt.s32.totalorder %s573_s26, %s567_s18 }
  0x59   : > { %p570_p3 = pneg %p569_p1 }
  0x5a   : > { %p576_p7 = por %p575_p6, %p574_p5 }
  0x5c   : > { %p577_p10 = pnand %p576_p7, %p570_p3 }
  0x5e   : > { %580 = shalt.err (!%p577_p10)
}
  0x5f   : > { %s581_s28 = scalar_lea.hbm %s803_s8, 256  ;;  %s585_s12 = scalar_lea.hbm %s881_s1, 512 }
  0x60   : > { %p582_p4 = scmp.ne.s32.totalorder %s803_s8, %s581_s28  ;;  %p586_p8 = scmp.lt.s32.totalorder %s803_s8, %s881_s1 }
  0x61   : > { %p587_p12 = scmp.lt.s32.totalorder %s585_s12, %s581_s28 }
  0x62   : > { %p583_p13 = pnand %p582_p4, %p726_p9 }
  0x63   : > { %p588_p0 = por %p587_p12, %p586_p8 }
  0x64   : > { %p584_p2 = pneg %p583_p13 }
  0x66   : > { %p589_p1 = pnand %p588_p0, %p584_p2 }
  0x68   : > { %592 = shalt.err (!%p589_p1)
}
  0x69   : > { %444 = dma.vmem_to_hbm [thread:$0]  (%p726_p9), %s794_s3, 256, %s803_s8, %s265_s16, %s657_s6, %s657_s6, %s658_s7  }
  0x6a PF: > { %s316_s21 = sand.u32 1, %s631_s9   ;;  %p888_p3 = scmp.ge.s32.totalorder %s651_s14, 2 }
  0x6b   : > { %s317_s29 = scalar_lea.sflag [#allocation4], %s316_s21 }
  0x6c   : > { %p453_p5 = pnand %p888_p3, %p733_p11 }
  0x6e   : > { %p454_p6 = pneg %p453_p5 }
  0x70   : > { %622 = dma.done.wait (%p454_p6), %s317_s29, 256  }
  0x71   : > { %624 = vsyncadd (%p454_p6), %s317_s29, 4294967040  ;;  %s326_s4 = scalar_lea.sflag [#allocation7], %s316_s21 }
  0x72   : > { %626 = dma.done.wait (%p454_p6), %s326_s4, 256  }
  0x73   : > { %628 = vsyncadd (%p454_p6), %s326_s4, 4294967040  ;;  %s22_s14 = sadd.s32 1, %s651_s14   ;;  %s889_s9 = smov %s635_s10 }
  0x74   : > { %p19_p7 = scmp.ge.s32.totalorder %s22_s14, 4   ;;  %s890_s10 = smov %s639_s11 }
  0x75   : > { %s891_s11 = smov %s731_s23  ;;  %s892_s12 = smov %s647_s13 }
  0x76   : > { %s893_s13 = smov %s895_s17  ;;  %21 = sbr.rel (!%p19_p7) target bundleno = 8 (0x8), region = 86 }
  0x7b   :  { %331 = vsyncpa [#allocation3], 1 }
  0x7c   :  { %333 = vsyncpa [#allocation3 + $0x1], 1 }
  0x7d   :  { %334 = vsyncpa [#allocation4], 1 }
  0x7e   :  { %336 = vsyncpa [#allocation4 + $0x1], 1 }
  0x7f   :  { %337 = vsyncpa [#allocation7], 1 }
  0x80   :  { %339 = vsyncpa [#allocation7 + $0x1], 1 }

</bundles_post_ra>
